<compile_context>
chip_gen: v6e
topology: v6e:2x2x1
jax: 0.10.0
libtpu: 0.0.40
codegen_flags: <defaults>
</compile_context>

<pallas_src>
import functools

import jax
import jax.numpy as jnp
from jax.experimental import pallas as pl
from jax.experimental.pallas import tpu as pltpu


def _round_up(x, m):
    return ((x + m - 1) // m) * m


def _img2point_kernel(tb_ref, lidar_ref, scale_ref, pts_ref, bidx_ref, img_ref,
                      out_ref, *, hf, wf):
    """Grid = (point_tiles, pixel_chunks); output resident across axis 1.

    tb_ref   : [n_tiles]          i32 SMEM (scalar-prefetch: batch id per tile)
    lidar_ref: [B, 16]            f32 SMEM (row-major flattened 4x4 lidar2img)
    scale_ref: [B, 2]             f32 SMEM ((wf-1)/w, (hf-1)/h per batch)
    pts_ref  : [3, tile_n]        f32 VMEM (lane-dense xyz, per-batch padded)
    bidx_ref : [1, tile_n]        i32 VMEM (batch index per point; -1 = padding)
    img_ref  : [1, C, chunk_cols] bf16 VMEM (this tile's batch only)
    out_ref  : [C, tile_n]        f32 VMEM (transposed point features, resident)
    """
    i = pl.program_id(0)
    k = pl.program_id(1)

    @pl.when(k == 0)
    def _():
        out_ref[...] = jnp.zeros_like(out_ref)

    chunk_cols = img_ref.shape[-1]
    tile_n = pts_ref.shape[1]
    b = tb_ref[i]                                         # this tile's batch id

    # ---------------- per-point projection, lane-dense [1, tile_n] -----------
    x = pts_ref[0:1, :]
    y = pts_ref[1:2, :]
    z = pts_ref[2:3, :]
    sel = bidx_ref[...] == b                              # real points of batch b

    def m(r, c):                                          # scalar SMEM read
        return lidar_ref[b, r * 4 + c]

    px = x * m(0, 0) + y * m(0, 1) + z * m(0, 2) + m(0, 3)
    py = x * m(1, 0) + y * m(1, 1) + z * m(1, 2) + m(1, 3)
    pz = x * m(2, 0) + y * m(2, 1) + z * m(2, 2) + m(2, 3)

    # ix = coor_x/w*(wf-1), iy = coor_y/h*(hf-1): the *2-1/+1/*0.5 round trips
    # of grid_sample(align_corners=True) folded.  Exact divide -- the approx
    # reciprocal fed floor() and flipped texels near integer coordinates.
    inv_z = 1.0 / jnp.maximum(pz, 1e-5)
    ix = jnp.clip(px * inv_z * scale_ref[b, 0], -8.0, wf + 8.0)
    iy = jnp.clip(py * inv_z * scale_ref[b, 1], -8.0, hf + 8.0)

    x0f = jnp.floor(ix)
    y0f = jnp.floor(iy)
    wx1 = ix - x0f
    wx0 = 1.0 - wx1
    wy1 = iy - y0f
    wy0 = 1.0 - wy1
    x0 = x0f.astype(jnp.int32)
    y0 = y0f.astype(jnp.int32)
    x1 = x0 + 1
    y1 = y0 + 1

    def corner_w(xc, yc, w):                              # padding_mode='zeros'
        valid = sel & (xc >= 0) & (xc < wf) & (yc >= 0) & (yc < hf)
        return jnp.where(valid, w, 0.0)                   # [1, tile_n]

    w00 = corner_w(x0, y0, wy0 * wx0)
    w01 = corner_w(x1, y0, wy0 * wx1)
    w10 = corner_w(x0, y1, wy1 * wx0)
    w11 = corner_w(x1, y1, wy1 * wx1)

    # ------------- shared bilinear stencil, transposed [chunk, tile_n] -------
    # flat00/delta trick: one iota + one subtract; corners are compares against
    # {0, 1, wf, wf+1}.  Invalid corners already have zero weight so row-wrap
    # aliasing contributes nothing.  Nested-select chain (requires wf >= 2).
    flat00 = y0 * wf + x0 - k * chunk_cols                # [1, tile_n]
    row = jax.lax.broadcasted_iota(jnp.int32, (chunk_cols, tile_n), 0)
    delta = row - flat00                                  # [chunk, tile_n]
    wmat_t = jnp.where(delta == 0, w00,
                       jnp.where(delta == 1, w01,
                                 jnp.where(delta == wf, w10,
                                           jnp.where(delta == wf + 1, w11, 0.0))))
    wmat_t = wmat_t.astype(jnp.bfloat16)                  # bf16 RHS for the MXU

    # ---- ONE bf16 matmul per (tile, chunk) against this tile's batch image --
    feats = jnp.dot(img_ref[0], wmat_t, preferred_element_type=jnp.float32)
    out_ref[...] += feats


def image2point_grid_sample(points_mean, mask, voxel_feats, coors, img_feats,
                            img_metas, *, tile_n=256, chunk_cols=1024):
    """Pallas port of Image2PointGridSample.forward.

    Like the PyTorch module, assumes coors[:, 0] is sorted by batch (which is
    what mmdet3d voxelization produces); the module's output ordering already
    relies on this.
    """
    del mask  # unused, as in the PyTorch module
    img = img_feats[0]
    bsz, c_img, hf, wf = img.shape
    assert wf >= 2, "flat-index stencil requires wf >= 2"
    p = hf * wf

    tile_n = max(128, (tile_n // 128) * 128)
    chunk_cols = max(128, (chunk_cols // 128) * 128)
    chunk_cols = min(chunk_cols, _round_up(p, 128))
    p_pad = _round_up(p, chunk_cols)

    # bf16 image (half HBM/DMA traffic, 2-4x MXU), channels-first, flattened
    # pixel axis zero-padded to a multiple of chunk_cols.
    img_flat = img.reshape(bsz, c_img, p).astype(jnp.bfloat16)
    if p_pad != p:
        img_flat = jnp.pad(img_flat, ((0, 0), (0, 0), (0, p_pad - p)))

    # ---- per-batch, tile_n-padded point layout (megablox-style grouping) ----
    pts = points_mean[:, 0, :3].astype(jnp.float32)       # squeeze(1), xyz
    n = pts.shape[0]
    bidx = coors[:, 0].astype(jnp.int32)                  # [n], batch-sorted

    counts = jnp.bincount(bidx, length=bsz).astype(jnp.int32)            # [B]
    starts = jnp.concatenate([jnp.zeros((1,), jnp.int32),
                              jnp.cumsum(counts)[:-1].astype(jnp.int32)])
    pad_counts = ((counts + tile_n - 1) // tile_n) * tile_n
    pad_ends = jnp.cumsum(pad_counts).astype(jnp.int32)
    pad_starts = pad_ends - pad_counts

    n_alloc = _round_up(n, tile_n) + (bsz - 1) * tile_n    # static upper bound
    n_tiles = n_alloc // tile_n

    dest = jnp.arange(n, dtype=jnp.int32) - starts[bidx] + pad_starts[bidx]
    pts_t = jnp.zeros((n_alloc, 3), jnp.float32).at[dest].set(pts).T  # [3, n_alloc]
    bidx_row = jnp.full((n_alloc,), -1, jnp.int32).at[dest].set(bidx)[None, :]

    # tile -> batch table (scalar-prefetch).  Slack tiles (only padding points)
    # are clamped to a valid batch; their in-kernel mask selects nothing.
    tile_start = jnp.arange(n_tiles, dtype=jnp.int32) * tile_n
    tile_batch = jnp.searchsorted(pad_ends, tile_start, side='right')
    tile_batch = jnp.minimum(tile_batch, bsz - 1).astype(jnp.int32)

    lidar2img = jnp.asarray(img_metas['lidar2img'], jnp.float32).reshape(bsz, 16)
    scale = jnp.asarray(
        [[(wf - 1.0) / float(s[1]), (hf - 1.0) / float(s[0])]
         for s in img_metas['pad_shape']], jnp.float32)   # [B, (sx, sy)]

    n_chunks = p_pad // chunk_cols

    # VMEM budget from the chosen tiles: double-buffered bf16 image chunk,
    # double-buffered point blocks, resident f32 accumulator and the
    # [chunk, tile_n] stencil temporaries (iota/delta/selects + bf16 wmat).
    vmem_bytes = (2 * c_img * chunk_cols * 2
                  + 2 * 4 * tile_n * 4
                  + 2 * c_img * tile_n * 4
                  + 6 * chunk_cols * tile_n * 4
                  + chunk_cols * tile_n * 2
                  + (4 << 20))
    try:
        vmem_cap = int(pltpu.get_tpu_info().vmem_capacity_bytes)
    except Exception:
        vmem_cap = 64 << 20                                # v7x-safe fallback
    vmem_limit = int(min(max(vmem_bytes, 32 << 20), (vmem_cap * 3) // 4))

    kernel = functools.partial(_img2point_kernel, hf=hf, wf=wf)

    grid_spec = pltpu.PrefetchScalarGridSpec(
        num_scalar_prefetch=1,
        grid=(n_tiles, n_chunks),
        in_specs=[
            pl.BlockSpec(memory_space=pltpu.MemorySpace.SMEM),     # lidar2img
            pl.BlockSpec(memory_space=pltpu.MemorySpace.SMEM),     # scales
            pl.BlockSpec((3, tile_n), lambda i, k, tb: (0, i)),    # points xyz
            pl.BlockSpec((1, tile_n), lambda i, k, tb: (0, i)),    # batch idx
            # TODO(synk): pipeline_mode=pl.Buffered(3) once the DMA is exposed.
            pl.BlockSpec((1, c_img, chunk_cols), lambda i, k, tb: (tb[i], 0, k)),
        ],
        out_specs=pl.BlockSpec((c_img, tile_n), lambda i, k, tb: (0, i)),
    )

    out_t = pl.pallas_call(
        kernel,
        out_shape=jax.ShapeDtypeStruct((c_img, n_alloc), jnp.float32),
        grid_spec=grid_spec,
        compiler_params=pltpu.CompilerParams(
            dimension_semantics=("parallel", "arbitrary"),
            vmem_limit_bytes=vmem_limit),
    )(tile_batch, lidar2img, scale, pts_t, bidx_row, img_flat)

    img2point = out_t[:, dest].T                          # back to coors order
    return jnp.concatenate([voxel_feats.astype(jnp.float32), img2point], axis=1)


# ----------------------------- pure-JAX reference -----------------------------
def _reference(points_mean, voxel_feats, coors, img_feats, img_metas):
    img = img_feats[0]
    bsz, c_img, hf, wf = img.shape
    pts = points_mean[:, 0, :3]
    bidx = coors[:, 0]
    l2i = jnp.asarray(img_metas['lidar2img'], jnp.float32)

    def bilinear(imb, ix, iy):  # imb: [c, hf, wf]
        x0 = jnp.floor(ix).astype(jnp.int32)
        y0 = jnp.floor(iy).astype(jnp.int32)
        x1, y1 = x0 + 1, y0 + 1
        wx1 = ix - x0
        wx0 = 1.0 - wx1
        wy1 = iy - y0
        wy0 = 1.0 - wy1

        def get(yc, xc):
            valid = (xc >= 0) & (xc < wf) & (yc >= 0) & (yc < hf)
            xs = jnp.clip(xc, 0, wf - 1)
            ys = jnp.clip(yc, 0, hf - 1)
            vals = imb[:, ys, xs]                         # [c, nb]
            return jnp.where(valid[None, :], vals, 0.0)

        return (get(y0, x0) * (wy0 * wx0)[None] + get(y0, x1) * (wy0 * wx1)[None]
                + get(y1, x0) * (wy1 * wx0)[None] + get(y1, x1) * (wy1 * wx1)[None])

    outs = []
    for b in range(bsz):
        sel = bidx == b
        xyz = pts[sel]
        xyz_h = jnp.concatenate(
            [xyz, jnp.ones((xyz.shape[0], 1), xyz.dtype)], axis=-1)
        proj = xyz_h @ l2i[b].T
        zc = jnp.maximum(proj[:, 2], 1e-5)
        cx = proj[:, 0] / zc
        cy = proj[:, 1] / zc
        h, w = img_metas['pad_shape'][b][:2]
        gx = cx / w * 2.0 - 1.0
        gy = cy / h * 2.0 - 1.0
        ix = (gx + 1.0) * 0.5 * (wf - 1)
        iy = (gy + 1.0) * 0.5 * (hf - 1)
        outs.append(bilinear(img[b], ix, iy))             # [c, nb]
    img2point = jnp.concatenate(outs, axis=1).T           # [n, c]
    return jnp.concatenate([voxel_feats, img2point], axis=1)


if __name__ == "__main__":
    key = jax.random.PRNGKey(0)
    B, NPTS, C_VOX, C_IMG, HF, WF = 2, 192, 16, 8, 16, 16
    H_IMG, W_IMG = 128, 128
    k1, k2, k3, k4 = jax.random.split(key, 4)

    # points with positive depth so most project inside the image
    pts = jax.random.uniform(k1, (NPTS, 1, 3), minval=-1.5, maxval=1.5)
    pts = pts.at[..., 2].set(
        jax.random.uniform(k2, (NPTS, 1), minval=2.0, maxval=6.0))
    points_mean = pts.astype(jnp.float32)

    # coors grouped (sorted) by batch, as produced by voxelization
    batch_idx = jnp.repeat(jnp.arange(B, dtype=jnp.int32), NPTS // B)
    coors = jnp.concatenate(
        [batch_idx[:, None], jnp.zeros((NPTS, 3), jnp.int32)], axis=1)

    voxel_feats = jax.random.normal(k3, (NPTS, C_VOX), jnp.float32)
    img_feats = [jax.random.normal(k4, (B, C_IMG, HF, WF), jnp.float32)]

    # deterministic pinhole-style lidar2img per batch (module has no params)
    base0 = jnp.array([[60.0, 0.0, W_IMG / 2, 0.0],
                       [0.0, 60.0, H_IMG / 2, 0.0],
                       [0.0, 0.0, 1.0, 0.0],
                       [0.0, 0.0, 0.0, 1.0]], jnp.float32)
    base1 = jnp.array([[55.0, 2.0, W_IMG / 2 + 4.0, 1.0],
                       [1.0, 58.0, H_IMG / 2 - 3.0, -1.0],
                       [0.0, 0.01, 1.0, 0.0],
                       [0.0, 0.0, 0.0, 1.0]], jnp.float32)
    lidar2img = jnp.stack([base0, base1], axis=0)

    img_metas = {
        'lidar2img': lidar2img,
        'pad_shape': [(H_IMG, W_IMG, 3)] * B,
    }

    # small tiles/chunks so the test exercises per-batch point tiling (incl.
    # a trailing all-padding tile) and the pixel-chunk reduction axis.
    out = image2point_grid_sample(points_mean, None, voxel_feats, coors,
                                  img_feats, img_metas, tile_n=128,
                                  chunk_cols=128)
    out = jax.block_until_ready(out)

    ref = _reference(points_mean, voxel_feats, coors, img_feats, img_metas)

    assert out.shape == (NPTS, C_VOX + C_IMG), out.shape
    assert jnp.allclose(out[:, :C_VOX], voxel_feats)
    # Projection/bilinear weights use exact f32 division now; the only error
    # source left is the bf16 image/stencil MXU inputs (~1e-2 worst case).
    max_err = float(jnp.max(jnp.abs(out[:, C_VOX:] - ref[:, C_VOX:])))
    assert jnp.allclose(out[:, C_VOX:], ref[:, C_VOX:], atol=5e-2, rtol=5e-2), max_err

    print("KERNEL_OK")
</pallas_src>

<mosaic_0001>
module attributes {stable_mosaic.version = 11 : i64} {
  func.func @_img2point_kernel(%arg0: i32, %arg1: i32, %arg2: memref<3xi32, #tpu.memory_space<smem>>, %arg3: memref<2x16xf32, #tpu.memory_space<smem>>, %arg4: memref<2x2xf32, #tpu.memory_space<smem>>, %arg5: memref<3x128xf32, #tpu.memory_space<vmem>>, %arg6: memref<1x128xi32, #tpu.memory_space<vmem>>, %arg7: memref<1x8x128xbf16, #tpu.memory_space<vmem>>, %arg8: memref<8x128xf32, #tpu.memory_space<vmem>>) attributes {dimension_semantics = [#tpu.dimension_semantics<parallel>, #tpu.dimension_semantics<arbitrary>], iteration_bounds = array<i64: 3, 2>, scalar_prefetch = 1 : i64, scratch_operands = 0 : i64, tpu.core_type = #tpu.core_type<tc>, window_params = [{transform_indices = @transform_0, window_bounds = array<i64: 2, 16>}, {transform_indices = @transform_1, window_bounds = array<i64: 2, 2>}, {transform_indices = @transform_2, window_bounds = array<i64: 3, 128>}, {transform_indices = @transform_3, window_bounds = array<i64: 1, 128>}, {transform_indices = @transform_4, window_bounds = array<i64: 1, 8, 128>}, {transform_indices = @transform_5, window_bounds = array<i64: 8, 128>}]} {
    %c0_i32 = arith.constant 0 : i32
    %0 = arith.cmpi eq, %arg1, %c0_i32 : i32
    %1 = arith.extui %0 : i1 to i32
    %c0_i32_0 = arith.constant 0 : i32
    %2 = arith.cmpi ne, %1, %c0_i32_0 : i32
    scf.if %2 {
      %cst_51 = arith.constant 0.000000e+00 : f32
      %198 = vector.broadcast %cst_51 : f32 to vector<8x128xf32>
      %c0_52 = arith.constant 0 : index
      %c0_53 = arith.constant 0 : index
      %199 = vector.load %arg8[%c0_52, %c0_53] : memref<8x128xf32, #tpu.memory_space<vmem>>, vector<8x128xf32>
      tpu.vector_store %arg8[%c0_52, %c0_53], %198 {strides = array<i32>} : memref<8x128xf32, #tpu.memory_space<vmem>>, vector<8x128xf32>,
    } else {
    }
    %3 = arith.index_cast %arg0 : i32 to index
    %4 = memref.load %arg2[%3] : memref<3xi32, #tpu.memory_space<smem>>
    %c0 = arith.constant 0 : index
    %c0_1 = arith.constant 0 : index
    %5 = vector.load %arg5[%c0, %c0_1] : memref<3x128xf32, #tpu.memory_space<vmem>>, vector<1x128xf32>
    %c1 = arith.constant 1 : index
    %c0_2 = arith.constant 0 : index
    %6 = vector.load %arg5[%c1, %c0_2] : memref<3x128xf32, #tpu.memory_space<vmem>>, vector<1x128xf32>
    %c2 = arith.constant 2 : index
    %c0_3 = arith.constant 0 : index
    %7 = vector.load %arg5[%c2, %c0_3] : memref<3x128xf32, #tpu.memory_space<vmem>>, vector<1x128xf32>
    %c0_4 = arith.constant 0 : index
    %c0_5 = arith.constant 0 : index
    %8 = vector.load %arg6[%c0_4, %c0_5] : memref<1x128xi32, #tpu.memory_space<vmem>>, vector<1x128xi32>
    %9 = vector.broadcast %4 : i32 to vector<1x128xi32>
    %10 = arith.cmpi eq, %8, %9 : vector<1x128xi32>
    %11 = arith.index_cast %4 : i32 to index
    %c0_6 = arith.constant 0 : index
    %12 = memref.load %arg3[%11, %c0_6] : memref<2x16xf32, #tpu.memory_space<smem>>
    %13 = vector.broadcast %12 : f32 to vector<1x128xf32>
    %14 = arith.mulf %5, %13 : vector<1x128xf32>
    %15 = arith.index_cast %4 : i32 to index
    %c1_7 = arith.constant 1 : index
    %16 = memref.load %arg3[%15, %c1_7] : memref<2x16xf32, #tpu.memory_space<smem>>
    %17 = vector.broadcast %16 : f32 to vector<1x128xf32>
    %18 = arith.mulf %6, %17 : vector<1x128xf32>
    %19 = arith.addf %14, %18 : vector<1x128xf32>
    %20 = arith.index_cast %4 : i32 to index
    %c2_8 = arith.constant 2 : index
    %21 = memref.load %arg3[%20, %c2_8] : memref<2x16xf32, #tpu.memory_space<smem>>
    %22 = vector.broadcast %21 : f32 to vector<1x128xf32>
    %23 = arith.mulf %7, %22 : vector<1x128xf32>
    %24 = arith.addf %19, %23 : vector<1x128xf32>
    %25 = arith.index_cast %4 : i32 to index
    %c3 = arith.constant 3 : index
    %26 = memref.load %arg3[%25, %c3] : memref<2x16xf32, #tpu.memory_space<smem>>
    %27 = vector.broadcast %26 : f32 to vector<1x128xf32>
    %28 = arith.addf %24, %27 : vector<1x128xf32>
    %29 = arith.index_cast %4 : i32 to index
    %c4 = arith.constant 4 : index
    %30 = memref.load %arg3[%29, %c4] : memref<2x16xf32, #tpu.memory_space<smem>>
    %31 = vector.broadcast %30 : f32 to vector<1x128xf32>
    %32 = arith.mulf %5, %31 : vector<1x128xf32>
    %33 = arith.index_cast %4 : i32 to index
    %c5 = arith.constant 5 : index
    %34 = memref.load %arg3[%33, %c5] : memref<2x16xf32, #tpu.memory_space<smem>>
    %35 = vector.broadcast %34 : f32 to vector<1x128xf32>
    %36 = arith.mulf %6, %35 : vector<1x128xf32>
    %37 = arith.addf %32, %36 : vector<1x128xf32>
    %38 = arith.index_cast %4 : i32 to index
    %c6 = arith.constant 6 : index
    %39 = memref.load %arg3[%38, %c6] : memref<2x16xf32, #tpu.memory_space<smem>>
    %40 = vector.broadcast %39 : f32 to vector<1x128xf32>
    %41 = arith.mulf %7, %40 : vector<1x128xf32>
    %42 = arith.addf %37, %41 : vector<1x128xf32>
    %43 = arith.index_cast %4 : i32 to index
    %c7 = arith.constant 7 : index
    %44 = memref.load %arg3[%43, %c7] : memref<2x16xf32, #tpu.memory_space<smem>>
    %45 = vector.broadcast %44 : f32 to vector<1x128xf32>
    %46 = arith.addf %42, %45 : vector<1x128xf32>
    %47 = arith.index_cast %4 : i32 to index
    %c8 = arith.constant 8 : index
    %48 = memref.load %arg3[%47, %c8] : memref<2x16xf32, #tpu.memory_space<smem>>
    %49 = vector.broadcast %48 : f32 to vector<1x128xf32>
    %50 = arith.mulf %5, %49 : vector<1x128xf32>
    %51 = arith.index_cast %4 : i32 to index
    %c9 = arith.constant 9 : index
    %52 = memref.load %arg3[%51, %c9] : memref<2x16xf32, #tpu.memory_space<smem>>
    %53 = vector.broadcast %52 : f32 to vector<1x128xf32>
    %54 = arith.mulf %6, %53 : vector<1x128xf32>
    %55 = arith.addf %50, %54 : vector<1x128xf32>
    %56 = arith.index_cast %4 : i32 to index
    %c10 = arith.constant 10 : index
    %57 = memref.load %arg3[%56, %c10] : memref<2x16xf32, #tpu.memory_space<smem>>
    %58 = vector.broadcast %57 : f32 to vector<1x128xf32>
    %59 = arith.mulf %7, %58 : vector<1x128xf32>
    %60 = arith.addf %55, %59 : vector<1x128xf32>
    %61 = arith.index_cast %4 : i32 to index
    %c11 = arith.constant 11 : index
    %62 = memref.load %arg3[%61, %c11] : memref<2x16xf32, #tpu.memory_space<smem>>
    %63 = vector.broadcast %62 : f32 to vector<1x128xf32>
    %64 = arith.addf %60, %63 : vector<1x128xf32>
    %cst = arith.constant 9.99999974E-6 : f32
    %65 = vector.broadcast %cst : f32 to vector<1x128xf32>
    %66 = arith.maximumf %64, %65 : vector<1x128xf32>
    %cst_9 = arith.constant 1.000000e+00 : f32
    %67 = vector.broadcast %cst_9 : f32 to vector<1x128xf32>
    %68 = arith.divf %67, %66 : vector<1x128xf32>
    %69 = arith.mulf %28, %68 : vector<1x128xf32>
    %70 = arith.index_cast %4 : i32 to index
    %c0_10 = arith.constant 0 : index
    %71 = memref.load %arg4[%70, %c0_10] : memref<2x2xf32, #tpu.memory_space<smem>>
    %72 = vector.broadcast %71 : f32 to vector<1x128xf32>
    %73 = arith.mulf %69, %72 : vector<1x128xf32>
    %cst_11 = arith.constant -8.000000e+00 : f32
    %cst_12 = arith.constant 2.400000e+01 : f32
    %74 = vector.broadcast %cst_11 : f32 to vector<1x128xf32>
    %75 = arith.maximumf %74, %73 : vector<1x128xf32>
    %76 = vector.broadcast %cst_12 : f32 to vector<1x128xf32>
    %77 = arith.minimumf %76, %75 : vector<1x128xf32>
    %78 = arith.mulf %46, %68 : vector<1x128xf32>
    %79 = arith.index_cast %4 : i32 to index
    %c1_13 = arith.constant 1 : index
    %80 = memref.load %arg4[%79, %c1_13] : memref<2x2xf32, #tpu.memory_space<smem>>
    %81 = vector.broadcast %80 : f32 to vector<1x128xf32>
    %82 = arith.mulf %78, %81 : vector<1x128xf32>
    %cst_14 = arith.constant -8.000000e+00 : f32
    %cst_15 = arith.constant 2.400000e+01 : f32
    %83 = vector.broadcast %cst_14 : f32 to vector<1x128xf32>
    %84 = arith.maximumf %83, %82 : vector<1x128xf32>
    %85 = vector.broadcast %cst_15 : f32 to vector<1x128xf32>
    %86 = arith.minimumf %85, %84 : vector<1x128xf32>
    %87 = math.floor %77 : vector<1x128xf32>
    %88 = math.floor %86 : vector<1x128xf32>
    %89 = arith.subf %77, %87 : vector<1x128xf32>
    %cst_16 = arith.constant 1.000000e+00 : f32
    %90 = vector.broadcast %cst_16 : f32 to vector<1x128xf32>
    %91 = arith.subf %90, %89 : vector<1x128xf32>
    %92 = arith.subf %86, %88 : vector<1x128xf32>
    %cst_17 = arith.constant 1.000000e+00 : f32
    %93 = vector.broadcast %cst_17 : f32 to vector<1x128xf32>
    %94 = arith.subf %93, %92 : vector<1x128xf32>
    %95 = arith.fptosi %87 : vector<1x128xf32> to vector<1x128xi32>
    %96 = arith.fptosi %88 : vector<1x128xf32> to vector<1x128xi32>
    %c1_i32 = arith.constant 1 : i32
    %97 = vector.broadcast %c1_i32 : i32 to vector<1x128xi32>
    %98 = arith.addi %95, %97 : vector<1x128xi32>
    %c1_i32_18 = arith.constant 1 : i32
    %99 = vector.broadcast %c1_i32_18 : i32 to vector<1x128xi32>
    %100 = arith.addi %96, %99 : vector<1x128xi32>
    %101 = arith.mulf %94, %91 : vector<1x128xf32>
    %c0_i32_19 = arith.constant 0 : i32
    %102 = vector.broadcast %c0_i32_19 : i32 to vector<1x128xi32>
    %103 = arith.cmpi sge, %95, %102 : vector<1x128xi32>
    %104 = arith.andi %10, %103 : vector<1x128xi1>
    %c16_i32 = arith.constant 16 : i32
    %105 = vector.broadcast %c16_i32 : i32 to vector<1x128xi32>
    %106 = arith.cmpi slt, %95, %105 : vector<1x128xi32>
    %107 = arith.andi %104, %106 : vector<1x128xi1>
    %c0_i32_20 = arith.constant 0 : i32
    %108 = vector.broadcast %c0_i32_20 : i32 to vector<1x128xi32>
    %109 = arith.cmpi sge, %96, %108 : vector<1x128xi32>
    %110 = arith.andi %107, %109 : vector<1x128xi1>
    %c16_i32_21 = arith.constant 16 : i32
    %111 = vector.broadcast %c16_i32_21 : i32 to vector<1x128xi32>
    %112 = arith.cmpi slt, %96, %111 : vector<1x128xi32>
    %113 = arith.andi %110, %112 : vector<1x128xi1>
    %cst_22 = arith.constant 0.000000e+00 : f32
    %114 = vector.broadcast %cst_22 : f32 to vector<1x128xf32>
    %115 = arith.select %113, %101, %114 : vector<1x128xi1>, vector<1x128xf32>
    %116 = arith.mulf %94, %89 : vector<1x128xf32>
    %c0_i32_23 = arith.constant 0 : i32
    %117 = vector.broadcast %c0_i32_23 : i32 to vector<1x128xi32>
    %118 = arith.cmpi sge, %98, %117 : vector<1x128xi32>
    %119 = arith.andi %10, %118 : vector<1x128xi1>
    %c16_i32_24 = arith.constant 16 : i32
    %120 = vector.broadcast %c16_i32_24 : i32 to vector<1x128xi32>
    %121 = arith.cmpi slt, %98, %120 : vector<1x128xi32>
    %122 = arith.andi %119, %121 : vector<1x128xi1>
    %c0_i32_25 = arith.constant 0 : i32
    %123 = vector.broadcast %c0_i32_25 : i32 to vector<1x128xi32>
    %124 = arith.cmpi sge, %96, %123 : vector<1x128xi32>
    %125 = arith.andi %122, %124 : vector<1x128xi1>
    %c16_i32_26 = arith.constant 16 : i32
    %126 = vector.broadcast %c16_i32_26 : i32 to vector<1x128xi32>
    %127 = arith.cmpi slt, %96, %126 : vector<1x128xi32>
    %128 = arith.andi %125, %127 : vector<1x128xi1>
    %cst_27 = arith.constant 0.000000e+00 : f32
    %129 = vector.broadcast %cst_27 : f32 to vector<1x128xf32>
    %130 = arith.select %128, %116, %129 : vector<1x128xi1>, vector<1x128xf32>
    %131 = arith.mulf %92, %91 : vector<1x128xf32>
    %c0_i32_28 = arith.constant 0 : i32
    %132 = vector.broadcast %c0_i32_28 : i32 to vector<1x128xi32>
    %133 = arith.cmpi sge, %95, %132 : vector<1x128xi32>
    %134 = arith.andi %10, %133 : vector<1x128xi1>
    %c16_i32_29 = arith.constant 16 : i32
    %135 = vector.broadcast %c16_i32_29 : i32 to vector<1x128xi32>
    %136 = arith.cmpi slt, %95, %135 : vector<1x128xi32>
    %137 = arith.andi %134, %136 : vector<1x128xi1>
    %c0_i32_30 = arith.constant 0 : i32
    %138 = vector.broadcast %c0_i32_30 : i32 to vector<1x128xi32>
    %139 = arith.cmpi sge, %100, %138 : vector<1x128xi32>
    %140 = arith.andi %137, %139 : vector<1x128xi1>
    %c16_i32_31 = arith.constant 16 : i32
    %141 = vector.broadcast %c16_i32_31 : i32 to vector<1x128xi32>
    %142 = arith.cmpi slt, %100, %141 : vector<1x128xi32>
    %143 = arith.andi %140, %142 : vector<1x128xi1>
    %cst_32 = arith.constant 0.000000e+00 : f32
    %144 = vector.broadcast %cst_32 : f32 to vector<1x128xf32>
    %145 = arith.select %143, %131, %144 : vector<1x128xi1>, vector<1x128xf32>
    %146 = arith.mulf %92, %89 : vector<1x128xf32>
    %c0_i32_33 = arith.constant 0 : i32
    %147 = vector.broadcast %c0_i32_33 : i32 to vector<1x128xi32>
    %148 = arith.cmpi sge, %98, %147 : vector<1x128xi32>
    %149 = arith.andi %10, %148 : vector<1x128xi1>
    %c16_i32_34 = arith.constant 16 : i32
    %150 = vector.broadcast %c16_i32_34 : i32 to vector<1x128xi32>
    %151 = arith.cmpi slt, %98, %150 : vector<1x128xi32>
    %152 = arith.andi %149, %151 : vector<1x128xi1>
    %c0_i32_35 = arith.constant 0 : i32
    %153 = vector.broadcast %c0_i32_35 : i32 to vector<1x128xi32>
    %154 = arith.cmpi sge, %100, %153 : vector<1x128xi32>
    %155 = arith.andi %152, %154 : vector<1x128xi1>
    %c16_i32_36 = arith.constant 16 : i32
    %156 = vector.broadcast %c16_i32_36 : i32 to vector<1x128xi32>
    %157 = arith.cmpi slt, %100, %156 : vector<1x128xi32>
    %158 = arith.andi %155, %157 : vector<1x128xi1>
    %cst_37 = arith.constant 0.000000e+00 : f32
    %159 = vector.broadcast %cst_37 : f32 to vector<1x128xf32>
    %160 = arith.select %158, %146, %159 : vector<1x128xi1>, vector<1x128xf32>
    %c16_i32_38 = arith.constant 16 : i32
    %161 = vector.broadcast %c16_i32_38 : i32 to vector<1x128xi32>
    %162 = arith.muli %96, %161 : vector<1x128xi32>
    %163 = arith.addi %162, %95 : vector<1x128xi32>
    %c128_i32 = arith.constant 128 : i32
    %164 = arith.muli %arg1, %c128_i32 : i32
    %165 = vector.broadcast %164 : i32 to vector<1x128xi32>
    %166 = arith.subi %163, %165 : vector<1x128xi32>
    %167 = tpu.iota {dimensions = array<i32: 0>} : vector<128x128xi32>
    %168 = vector.broadcast %166 : vector<1x128xi32> to vector<128x128xi32>
    %169 = arith.subi %167, %168 : vector<128x128xi32>
    %c0_i32_39 = arith.constant 0 : i32
    %170 = vector.broadcast %c0_i32_39 : i32 to vector<128x128xi32>
    %171 = arith.cmpi eq, %169, %170 : vector<128x128xi32>
    %c1_i32_40 = arith.constant 1 : i32
    %172 = vector.broadcast %c1_i32_40 : i32 to vector<128x128xi32>
    %173 = arith.cmpi eq, %169, %172 : vector<128x128xi32>
    %c16_i32_41 = arith.constant 16 : i32
    %174 = vector.broadcast %c16_i32_41 : i32 to vector<128x128xi32>
    %175 = arith.cmpi eq, %169, %174 : vector<128x128xi32>
    %c17_i32 = arith.constant 17 : i32
    %176 = vector.broadcast %c17_i32 : i32 to vector<128x128xi32>
    %177 = arith.cmpi eq, %169, %176 : vector<128x128xi32>
    %cst_42 = arith.constant 0.000000e+00 : f32
    %178 = vector.shape_cast %160 : vector<1x128xf32> to vector<1x128xf32>
    %179 = vector.broadcast %178 : vector<1x128xf32> to vector<128x128xf32>
    %180 = vector.broadcast %cst_42 : f32 to vector<128x128xf32>
    %181 = arith.select %177, %179, %180 : vector<128x128xi1>, vector<128x128xf32>
    %182 = vector.shape_cast %145 : vector<1x128xf32> to vector<1x128xf32>
    %183 = vector.broadcast %182 : vector<1x128xf32> to vector<128x128xf32>
    %184 = arith.select %175, %183, %181 : vector<128x128xi1>, vector<128x128xf32>
    %185 = vector.shape_cast %130 : vector<1x128xf32> to vector<1x128xf32>
    %186 = vector.broadcast %185 : vector<1x128xf32> to vector<128x128xf32>
    %187 = arith.select %173, %186, %184 : vector<128x128xi1>, vector<128x128xf32>
    %188 = vector.shape_cast %115 : vector<1x128xf32> to vector<1x128xf32>
    %189 = vector.broadcast %188 : vector<1x128xf32> to vector<128x128xf32>
    %190 = arith.select %171, %189, %187 : vector<128x128xi1>, vector<128x128xf32>
    %191 = arith.truncf %190 : vector<128x128xf32> to vector<128x128xbf16>
    %c0_43 = arith.constant 0 : index
    %c0_44 = arith.constant 0 : index
    %c0_45 = arith.constant 0 : index
    %192 = vector.load %arg7[%c0_43, %c0_44, %c0_45] : memref<1x8x128xbf16, #tpu.memory_space<vmem>>, vector<1x8x128xbf16>
    %193 = vector.shape_cast %192 : vector<1x8x128xbf16> to vector<8x128xbf16>
    %cst_46 = arith.constant dense<0.000000e+00> : vector<8x128xf32>
    %194 = tpu.matmul %193, %191, %cst_46 {dimension_numbers = #tpu.dot_dimension_numbers<[1], [0], [0], [1], [0, 0, 1, 1], [], []>} : vector<8x128xbf16>, vector<128x128xbf16>, vector<8x128xf32> -> vector<8x128xf32>
    %c0_47 = arith.constant 0 : index
    %c0_48 = arith.constant 0 : index
    %195 = vector.load %arg8[%c0_47, %c0_48] : memref<8x128xf32, #tpu.memory_space<vmem>>, vector<8x128xf32>
    %196 = arith.addf %195, %194 : vector<8x128xf32>
    %c0_49 = arith.constant 0 : index
    %c0_50 = arith.constant 0 : index
    %197 = vector.load %arg8[%c0_49, %c0_50] : memref<8x128xf32, #tpu.memory_space<vmem>>, vector<8x128xf32>
    tpu.vector_store %arg8[%c0_49, %c0_50], %196 {strides = array<i32>} : memref<8x128xf32, #tpu.memory_space<vmem>>, vector<8x128xf32>,
    return
  }
  func.func @transform_0(%arg0: i32, %arg1: i32, %arg2: memref<3xi32, #tpu.memory_space<smem>>) -> (i32, i32) {
    %c0_i32 = arith.constant 0 : i32
    %c0_i32_0 = arith.constant 0 : i32
    %c0_i32_1 = arith.constant 0 : i32
    return %c0_i32, %c0_i32_0 : i32, i32
  }
  func.func @transform_1(%arg0: i32, %arg1: i32, %arg2: memref<3xi32, #tpu.memory_space<smem>>) -> (i32, i32) {
    %c0_i32 = arith.constant 0 : i32
    %c0_i32_0 = arith.constant 0 : i32
    %c0_i32_1 = arith.constant 0 : i32
    return %c0_i32, %c0_i32_0 : i32, i32
  }
  func.func @transform_2(%arg0: i32, %arg1: i32, %arg2: memref<3xi32, #tpu.memory_space<smem>>) -> (i32, i32) {
    %c0_i32 = arith.constant 0 : i32
    %c0_i32_0 = arith.constant 0 : i32
    return %c0_i32, %arg0 : i32, i32
  }
  func.func @transform_3(%arg0: i32, %arg1: i32, %arg2: memref<3xi32, #tpu.memory_space<smem>>) -> (i32, i32) {
    %c0_i32 = arith.constant 0 : i32
    %c0_i32_0 = arith.constant 0 : i32
    return %c0_i32, %arg0 : i32, i32
  }
  func.func @transform_4(%arg0: i32, %arg1: i32, %arg2: memref<3xi32, #tpu.memory_space<smem>>) -> (i32, i32, i32) {
    %0 = arith.index_cast %arg0 : i32 to index
    %1 = memref.load %arg2[%0] : memref<3xi32, #tpu.memory_space<smem>>
    %c0_i32 = arith.constant 0 : i32
    %c0_i32_0 = arith.constant 0 : i32
    return %1, %c0_i32, %arg1 : i32, i32, i32
  }
  func.func @transform_5(%arg0: i32, %arg1: i32, %arg2: memref<3xi32, #tpu.memory_space<smem>>) -> (i32, i32) {
    %c0_i32 = arith.constant 0 : i32
    %c0_i32_0 = arith.constant 0 : i32
    return %c0_i32, %arg0 : i32, i32
  }
}

</mosaic_0001>

<bundles_post_ra>
// kernel: tpu_custom_call.1
= control target key start
LH: loop header
LB: loop body
LE: loop exit
PB: predicated region body
PF: predicated region fallthrough
CT: control target
= control target key end

     0   :  { %s1281_s21 = smov [#allocation3]   ;;  %s1904_s0 = inlined_call_operand.hbm [shape: s32[3], index: 0, kind: input, shape index: {}]   ;;  %s1905_s1 = inlined_call_operand.hbm [shape: f32[2,16], index: 1, kind: input, shape index: {}]   ;;  %s1906_s2 = inlined_call_operand.vmem [shape: f32[2,2], index: 2, kind: input, shape index: {}]   ;;  %s1907_s3 = inlined_call_operand.hbm [shape: f32[3,384], index: 3, kind: input, shape index: {}]   ;;  %s1908_s4 = inlined_call_operand.vmem [shape: s32[1,384], index: 4, kind: input, shape index: {}]   ;;  %s1909_s5 = inlined_call_operand.hbm [shape: bf16[2,8,256], index: 5, kind: input, shape index: {}]   ;;  %s1910_s6 = inlined_call_operand.hbm [shape: f32[8,384], index: 6, kind: output, shape index: {}]  }
   0x1   :  { %1929 = sst [smem:[#allocation31_spill]] %s1905_s1 }
   0x2   :  { %1930 = sst [smem:[#allocation32_spill]] %s1906_s2 }
   0x3   :  { %1931 = sst [smem:[#allocation33_spill]] %s1907_s3 }
   0x4   :  { %1932 = sst [smem:[#allocation34_spill]] %s1908_s4 }
   0x5   :  { %1933 = sst [smem:[#allocation35_spill]] %s1909_s5 }
   0x6   :  { %1934 = sst [smem:[#allocation36_spill]] %s1910_s6 }
   0x7   :  { %12 = dma.hbm_to_smem %s1904_s0, 16, %s1281_s21, [#allocation2] }
   0x8   :  { %1215 = dma.done.wait [#allocation2], 16 }
   0x9   :  { %1216 = vsyncadd [#allocation2], 4294967280 }
   0xa   :  { %14 = sfence }
   0xb   :  { %15 = vsyncpa [#allocation7], 0 }
   0xc   :  { %16 = vsyncpa [#allocation8], 0 }
   0xd   :  { %17 = vsyncpa [#allocation5], 0 }
   0xe   :  { %19 = vsyncpa [#allocation5 + $0x1], 0 }
   0xf   :  { %20 = vsyncpa [#allocation12], 0 }
  0x10   :  { %22 = vsyncpa [#allocation12 + $0x1], 0 }
  0x11   :  { %23 = vsyncpa [#allocation6], 0 }
  0x12   :  { %25 = vsyncpa [#allocation6 + $0x1], 0  ;;  %s1328_s24 = smov 0   ;;  %s1330_s25 = smov 0  }
  0x13   :  { %s1332_s26 = smov 0   ;;  %s1334_s27 = smov 0  }
  0x14   :  { %s1336_s0 = smov 0   ;;  %s1338_s28 = smov 0  }
  0x15   :  { %s1340_s29 = smov 0   ;;  %s1342_s30 = smov 0  }
  0x16   :  { %s1344_s7 = smov 0   ;;  %s1346_s8 = smov 0  }
  0x17   :  { %s1348_s9 = smov 0  }
  0x18 LB: > { %1935 = sst [smem:[#allocation22_spill]] %s1251_s27  ;;  %s860_s10 = sadd.s32 4294967295, %s1279_s9   ;;  %s1279_s9 = sphi %s1348_s9, %s31_s9   ;;  %s1275_s8 = sphi %s1346_s8, %s1990_s8   ;;  %s1271_s7 = sphi %s1344_s7, %s1998_s7   ;;  %s1267_s30 = sphi %s1342_s30, %s1988_s30   ;;  %s1263_s29 = sphi %s1340_s29, %s1997_s29   ;;  %s1259_s28 = sphi %s1338_s28, %s1996_s28   ;;  %s1255_s0 = sphi %s1336_s0, %s1995_s0   ;;  %s1251_s27 = sphi %s1334_s27, %s1994_s27   ;;  %s1247_s26 = sphi %s1332_s26, %s1993_s26   ;;  %s1243_s25 = sphi %s1330_s25, %s1992_s25   ;;  %s1239_s24 = sphi %s1328_s24, %s1991_s24  }
  0x19   : > { %1936 = sst [smem:[#allocation23_spill]] %s1263_s29  ;;  %p161_p0 = scmp.ne.s32.totalorder %s1243_s25, %s1239_s24 }
  0x1a   : > { %1937 = sst [smem:[#allocation24_spill]] %s1267_s30  ;;  %p1383_p1 = scmp.eq.s32.totalorder %s860_s10, 0 }
  0x1b   : > { %1938 = sst [smem:[#allocation25_spill]] %s1275_s8  ;;  %p862_p2 = scmp.ge.s32.totalorder %s1279_s9, 1 }
  0x1c   : > { %s1939_s11 = scalar_select %p1383_p1, 1, 0 }
  0x1d   : > { %p198_p3 = scmp.lt.s32.totalorder %s1279_s9, 7  ;;  %p1391_p4 = por %p161_p0, %p1383_p1 }
  0x1e   : > { %p1395_p5 = scmp.eq.s32.totalorder %s860_s10, 5  ;;  %s1943_s2 = sld [smem:[#allocation32_spill]] }
  0x1f   : > { %s1940_s12 = scalar_select %p1391_p4, 1, 0 }
  0x20   : > { %p1399_p6 = pnand %p862_p2, %p198_p3  ;;  %s1282_s19 = smov [#allocation4]  }
  0x21   : > { %s1945_s1 = sld [smem:[#allocation31_spill]] }
  0x22   : > { %s1942_s14 = scalar_select %p1399_p6, 1, 0 }
  0x23   : > { %p933_p7 = pneg %p1399_p6 }
  0x24   : > { %s220_s17 = sshll.u32 %s1943_s2, 4  ;;  %s221_s17 = int_to_ptr.vmem [resolvable:$true] %s220_s17 }
  0x25   : > { %p1410_p8 = pnand %p933_p7, %p1383_p1  ;;  %s1074_s22 = scalar_lea.vmem %s221_s17, 32 }
  0x26   : > { %p1075_p9 = scmp.ne.s32.totalorder %s221_s17, %s1074_s22  ;;  %p1082_p13 = scmp.lt.s32.totalorder %s221_s17, %s221_s17 }
  0x27   : > { %936 = dma.hbm_to_smem (!%p1410_p8), %s1945_s1, 32, %s1282_s19, [#allocation7]  }
  0x28   : > { %p1076_p10 = pneg %p1410_p8  ;;  %p1083_p0 = scmp.lt.s32.totalorder %s1074_s22, %s1074_s22 }
  0x2a   : > { %p1077_p11 = pnand %p1076_p10, %p1075_p9  ;;  %p1084_p2 = por %p1083_p0, %p1082_p13 }
  0x2c   : > { %p1078_p12 = pneg %p1077_p11 }
  0x2e   : > { %p1085_p3 = pnand %p1084_p2, %p1078_p12 }
  0x30   : > { %1088 = shalt.err (!%p1085_p3)
}
  0x31   : > { %s1283_s23 = smov [#allocation9]   ;;  %s861_s24 = sadd.s32 4294967294, %s1279_s9  }
  0x32   : > { %939 = dma.vmem_to_smem (!%p1410_p8), %s221_s17, 32, %s1283_s23, [#allocation8]  }
  0x33   : > { %p99_p7 = scmp.ne.s32.totalorder %s1259_s28, %s1255_s0  ;;  %p1913_p9 = scmp.eq.s32.totalorder %s1279_s9, 0 }
  0x34   : > { %p105_p10 = scmp.ne.s32.totalorder %s1255_s0, %s1251_s27  ;;  %p191_p12 = scmp.eq.s32.totalorder %s861_s24, 5 }
  0x35   : > { %p1431_p11 = por %p1395_p5, %p99_p7  ;;  %p101_p13 = por %p1913_p9, %p99_p7 }
  0x36   : > { %p1439_p0 = por %p1383_p1, %p105_p10  ;;  %p1443_p2 = por %p191_p12, %p105_p10 }
  0x37   : > { %s1946_s10 = scalar_select %p1431_p11, 1, 0 }
  0x38   : > { %s1948_s15 = scalar_select %p1439_p0, 1, 0 }
  0x39   : > { %1947 = sst [smem:[#allocation26_spill]] %s1946_s10  ;;  %p955_p8 = scmp.lt.s32.totalorder %s1279_s9, 6 }
  0x3a   : > { %s1949_s16 = scalar_select %p1443_p2, 1, 0 }
  0x3b   : > { %s231_s17 = sand.u32 1, %s1259_s28   ;;  %s867_s18 = sshll.u32 %s1275_s8, 6 }
  0x3c   : > { %1950 = sst [smem:[#allocation27_spill]] %s1949_s16  ;;  %s866_s13 = sshll.u32 %s231_s17, 2 }
  0x3d   : > { %s1951_s3 = sld [smem:[#allocation33_spill]]  ;;  %s235_s22 = scalar_lea.vmem [#allocation10], %s866_s13 }
  0x3e   : > { %s242_s23 = sshll.u32 %s235_s22, 4  ;;  %p1455_p5 = pnand %p955_p8, %p101_p13  ;;  %s243_s23 = int_to_ptr.vmem [resolvable:$true] %s242_s23 }
  0x3f   : > { %s232_s1 = scalar_lea.sflag [#allocation5], %s231_s17  ;;  %s1102_s2 = scalar_lea.vmem %s243_s23, 64 }
  0x40   : > { %p1091_p3 = pneg %p1455_p5  ;;  %p1103_p7 = scmp.ne.s32.totalorder %s243_s23, %s1102_s2 }
  0x41   : > { %s1284_s16 = smov [#allocation10]  }
  0x42   : > { %p1105_p10 = pnand %p1103_p7, %p1091_p3  ;;  %s1107_s27 = sshll.u32 %s1284_s16, 4  ;;  %s1108_s27 = int_to_ptr.vmem [resolvable:$false] %s1107_s27 }
  0x43   : > { %s240_s21 = scalar_lea.hbm %s1951_s3, %s867_s18  ;;  %s1109_s18 = scalar_lea.vmem %s1108_s27, 128 }
  0x44   : > { %p1106_p12 = pneg %p1105_p10  ;;  %p1110_p9 = scmp.lt.s32.totalorder %s243_s23, %s1108_s27 }
  0x45   : > { %p1111_p2 = scmp.lt.s32.totalorder %s1109_s18, %s1102_s2 }
  0x47   : > { %p1112_p11 = por %p1111_p2, %p1110_p9 }
  0x49   : > { %p1113_p13 = pnand %p1112_p11, %p1106_p12 }
  0x4b   : > { %1116 = shalt.err (!%p1113_p13)
}
  0x4c   : > { %943 = dma.hbm_to_vmem [thread:$0]  (!%p1455_p5), %s240_s21, 64, %s243_s23, %s232_s1  }
  0x4d   : > { %s40_s16 = sadd.s32 1, %s1271_s7  ;;  %s43_s2 = sadd.s32 1, %s1275_s8 }
  0x4e   : > { %p41_p3 = scmp.ge.s32.totalorder %s40_s16, 2  ;;  %p155_p9 = scmp.ne.s32.totalorder %s1247_s26, %s1243_s25 }
  0x4f   : > { %s92_s27 = sadd.s32 1, %s1259_s28  ;;  %s141_s17 = sld [smem:[#allocation3 + %s1275_s8]] }
  0x50   : > { %s2000_s2 = smov (!%p41_p3, %s43_s2), %s1275_s8  ;;  %s2002_s16 = smov (%p41_p3, %s40_s16), 0 }
  0x51   : > { %1953 = sst [smem:[#allocation28_spill]] %s2002_s16  ;;  %p45_p11 = scmp.ge.s32.totalorder %s2000_s2, 3 }
  0x52   : > { %p1954_p2 = scmp.eq.s32.totalorder %s1279_s9, 0  ;;  %s144_s1 = ssub.s32 %s1271_s7, %s2002_s16 }
  0x53   : > { %s2004_s2 = smov (%p45_p11, %s2000_s2), 0  ;;  %s255_s19 = sand.u32 1, %s1247_s26  }
  0x54   : > { %p1474_p7 = por %p155_p9, %p1954_p2  ;;  %1956 = sst [smem:[#allocation29_spill]] %s2004_s2 }
  0x55   : > { %s89_s20 = ssub.s32 %s1275_s8, %s2004_s2  ;;  %s142_s21 = sld [smem:[#allocation3 + %s2004_s2]] }
  0x56   : > { %p90_p5 = scmp.eq.s32.totalorder %s89_s20, 0  ;;  %p1490_p10 = pnand %p955_p8, %p1474_p7 }
  0x57   : > { %s922_s23 = scalar_select %p1474_p7, [#allocation3], [#allocation14] }
  0x58   : > { %s1497_s24 = scalar_select %p90_p5, %s1259_s28, %s92_s27  }
  0x59   : > { %s923_s18 = scalar_select %p1474_p7, %s1275_s8, 0 }
  0x5a   : > { %1958 = sst [smem:[#allocation30_spill]] %s1497_s24  ;;  %s2006_s23 = smov (!%p955_p8, %s922_s23), [#allocation15] }
  0x5b   : > { %s143_s3 = ssub.s32 %s141_s17, %s142_s21  ;;  %s148_s16 = sadd.s32 1, %s1247_s26 }
  0x5c   : > { %s145_s6 = sor.u32 %s144_s1, %s143_s3  ;;  %s868_s20 = sshll.u32 %s255_s19, 2 }
  0x5d   : > { %p146_p12 = scmp.eq.s32.totalorder %s145_s6, 0  ;;  %s2008_s18 = smov (!%p955_p8, %s923_s18), 0 }
  0x5e   : > { %s260_s10 = sld [smem:[%s2006_s23 + %s2008_s18]]  ;;  %s259_s29 = scalar_lea.vmem [#allocation11], %s868_s20 }
  0x5f   : > { %s1508_s2 = scalar_select %p146_p12, %s1247_s26, %s148_s16  }
  0x60   : > { %s269_s4 = sshll.u32 %s259_s29, 4  ;;  %s1959_s5 = sld [smem:[#allocation35_spill]]  ;;  %s1511_s4 = int_to_ptr.vmem [resolvable:$true] %s269_s4 }
  0x61   : > { %s256_s3 = scalar_lea.sflag [#allocation12], %s255_s19  ;;  %p1119_p3 = pneg %p1490_p10 }
  0x64   : > { %s869_s30 = sshll.u32 %s260_s10, 1 }
  0x65   : > { %s265_s27 = sadd.s32 %s1271_s7, %s869_s30 }
  0x66   : > { %s870_s13 = sshll.u32 %s265_s27, 6  ;;  %s1122_s29 = scalar_lea.hbm %s1959_s5, 256 }
  0x67   : > { %s267_s17 = scalar_lea.hbm %s1959_s5, %s870_s13 }
  0x68   : > { %s1117_s1 = scalar_lea.hbm %s267_s17, 64  ;;  %p1123_p11 = scmp.lt.s32.totalorder %s267_s17, %s1959_s5 }
  0x69   : > { %p1118_p13 = scmp.ne.s32.totalorder %s267_s17, %s1117_s1  ;;  %p1124_p2 = scmp.lt.s32.totalorder %s1122_s29, %s1117_s1 }
  0x6b   : > { %p1120_p8 = pnand %p1119_p3, %p1118_p13  ;;  %p1125_p7 = por %p1124_p2, %p1123_p11 }
  0x6d   : > { %p1121_p9 = pneg %p1120_p8 }
  0x6f   : > { %p1126_p5 = pnand %p1125_p7, %p1121_p9 }
  0x71   : > { %1129 = shalt.err (!%p1126_p5)
}
  0x72   : > { %s1130_s8 = scalar_lea.vmem %s1511_s4, 64  ;;  %s1285_s19 = smov [#allocation11]  }
  0x73   : > { %p1131_p12 = scmp.ne.s32.totalorder %s1511_s4, %s1130_s8  ;;  %s1135_s21 = sshll.u32 %s1285_s19, 4  ;;  %s1136_s21 = int_to_ptr.vmem [resolvable:$false] %s1135_s21 }
  0x74   : > { %s1137_s23 = scalar_lea.vmem %s1136_s21, 128  ;;  %p1138_p8 = scmp.lt.s32.totalorder %s1511_s4, %s1136_s21 }
  0x75   : > { %p1133_p4 = pnand %p1131_p12, %p1119_p3  ;;  %p1139_p0 = scmp.lt.s32.totalorder %s1137_s23, %s1130_s8 }
  0x77   : > { %p1134_p13 = pneg %p1133_p4  ;;  %p1140_p1 = por %p1139_p0, %p1138_p8 }
  0x79   : > { %p1141_p6 = pnand %p1140_p1, %p1134_p13 }
  0x7b   : > { %1144 = shalt.err (!%p1141_p6)
}
  0x7c   : > { %948 = dma.hbm_to_vmem [thread:$0]  (!%p1490_p10), %s267_s17, 64, %s1511_s4, %s256_s3  }
  0x7d   : > { %p1960_p9 = scmp.ne.s32.totalorder %s1942_s14, 0 }
  0x7e   : > { %p1961_p11 = scmp.ne.s32.totalorder (!%p1960_p9), %s1939_s11, 0 }
  0x7f   : > { %278 = sbr.rel (%p1960_p9) target bundleno = 486 (0x1e6), region = 40 }
  0x84   : > { %1218 = dma.done.wait (%p1961_p11), [#allocation7], 32  }
  0x85   : > { %1220 = vsyncadd (%p1961_p11), [#allocation7], 4294967264 }
  0x86   : > { %1222 = dma.done.wait (%p1961_p11), [#allocation8], 32  }
  0x87   : > { %1224 = vsyncadd (%p1961_p11), [#allocation8], 4294967264  ;;  %s1541_s22 = sand.u32 1, %s1255_s0   ;;  %p1962_p1 = scmp.ne.s32.totalorder %s1948_s15, 0 }
  0x88   : > { %s874_s4 = sshll.u32 %s1541_s22, 2  ;;  %s289_s14 = scalar_lea.sflag [#allocation5], %s1541_s22 }
  0x89   : > { %s1545_s24 = scalar_lea.vmem [#allocation10], %s874_s4 }
  0x8a   : > { %1226 = dma.done.wait (%p1962_p1), %s289_s14, 64  }
  0x8b   : > { %1228 = vsyncadd (%p1962_p1), %s289_s14, 4294967232  ;;  %s297_s18 = sand.u32 1, %s1243_s25   ;;  %p1963_p4 = scmp.ne.s32.totalorder %s1940_s12, 0 }
  0x8c   : > { %s1552_s11 = sshll.u32 %s297_s18, 2  ;;  %s298_s20 = scalar_lea.sflag [#allocation12], %s297_s18 }
  0x8d   : > { %1230 = dma.done.wait (%p1963_p4), %s298_s20, 64  }
  0x8e   : > { %1232 = vsyncadd (%p1963_p4), %s298_s20, 4294967232 }
  0x8f   : > { %306 = sfence }
  0x90   : > { %s1964_s13 = sld [smem:[#allocation24_spill]]  ;;  %s876_s17 = sshll.u32 %s1541_s22, 3 }
  0x91   : > { %s1568_s16 = scalar_lea.vmem [#allocation13], %s876_s17  ;;  %s1966_s29 = sld [smem:[#allocation23_spill]] }
  0x96   : > { %p337_p6 = scmp.lt.s32.totalorder %s1964_s13, 2 }
  0x97   : > { %p877_p0 = scmp.ne.s32.totalorder %s1966_s29, 0 }
  0x98   : > { %s2010_s13 = smov (!%p337_p6, %s1964_s13), 2 }
  0x99   : > { %345 = sbr.rel (%p877_p0) target bundleno = 160 (0xa0), region = 60 }
  0x9e   : > { %v1286_v0 = vmov 0.0  }
  0x9f   : > { %346 = vst [vmem:[%s1568_s16] sm:$0xff] %v1286_v0 }
  0xa0 PF: > { %v1287_v1 = vmov 0.0   ;;  %s1967_s12 = sld [smem:[#allocation24_spill]]  ;;  %vm1288_vm0 = vmmov 0   ;;  %v348_v2 = vld [vmem:[%s1545_s24] sm:$0x1]  ;;  %v466_v54 = vlaneseq }
  0xa1   : > { %893 = vmatprep.subr.bf16.mxu0 %v1287_v1  ;;  %909 = vmatprep.mubr.msk.bf16.mxu0 %vm1288_vm0, %v1287_v1  ;;  %v349_v3 = vld [vmem:[%s1545_s24 + $0x1] sm:$0x1]  ;;  %v350_v4 = vld [vmem:[%s1545_s24 + $0x2] sm:$0x1] }
  0xa2   : > { %v1616_v61 = vshrl.u32 %v466_v54, 7 }
  0xa6   : > { %s1574_s10 = sld [smem:[#allocation3 + %s1967_s12]] }
  0xac   : > { %s1578_s30 = sshll.u32 %s1574_s10, 7  ;;  %v352_v50 = vstv %s1574_s10  ;;  %s1980_s10 = scalar_lea.vmem [#allocation11], %s1552_s11 }
  0xad   : > { %s1928_s8 = sadd.s32 1, %s1578_s30  ;;  %s1582_s19 = sld [smem:[#allocation4 + %s1578_s30]] }
  0xae   : > { %s1586_s21 = sld [smem:[#allocation4 + %s1928_s8]]  ;;  %s372_s23 = sadd.s32 4, %s1578_s30 }
  0xaf   : > { %s376_s4 = sadd.s32 5, %s1578_s30  ;;  %s390_s14 = sadd.s32 8, %s1578_s30 }
  0xb0   : > { %s391_s18 = sld [smem:[#allocation4 + %s390_s14]]  ;;  %s394_s20 = sadd.s32 9, %s1578_s30 }
  0xb1   : > { %s395_s17 = sld [smem:[#allocation4 + %s394_s20]]  ;;  %s399_s15 = sadd.s32 10, %s1578_s30 }
  0xb2   : > { %s400_s3 = sld [smem:[#allocation4 + %s399_s15]]  ;;  %s404_s1 = sadd.s32 11, %s1578_s30 }
  0xb3   : > { %s405_s29 = sld [smem:[#allocation4 + %s404_s1]]  ;;  %s363_s6 = sadd.s32 2, %s1578_s30  ;;  %v356_v13 = vstv %s1582_s19 }
  0xb4   : > { %s373_s27 = sld [smem:[#allocation4 + %s372_s23]]  ;;  %s381_s5 = sadd.s32 6, %s1578_s30  ;;  %v360_v15 = vstv %s1586_s21  ;;  %v357_v19 = vmul.f32 %v356_v13, %v348_v2 }
  0xb5   : > { %s377_s8 = sld [smem:[#allocation4 + %s376_s4]]  ;;  %s368_s23 = sadd.s32 3, %s1578_s30  ;;  %v361_v20 = vmul.f32 %v360_v15, %v349_v3  ;;  %v478_v15 = vadd.s32 88, %v1616_v61 }
  0xb6   : > { %v392_v5 = vstv %s391_s18  ;;  %s364_s14 = sld [smem:[#allocation4 + %s363_s6]]  ;;  %s386_s4 = sadd.s32 7, %s1578_s30 }
  0xb7   : > { %v393_v6 = vmul.f32 %v392_v5, %v348_v2  ;;  %v396_v7 = vstv %s395_s17  ;;  %s382_s20 = sld [smem:[#allocation4 + %s381_s5]]  ;;  %v362_v26 = vadd.f32 %v361_v20, %v357_v19  ;;  %s1968_s6 = sadd.s32 1, %s1578_s30  ;;  %v1656_v20 = vadd.s32 72, %v1616_v61 }
  0xb8   : > { %v397_v8 = vmul.f32 %v396_v7, %v349_v3  ;;  %v401_v9 = vstv %s400_s3  ;;  %s369_s24 = sld [smem:[#allocation4 + %s368_s23]]  ;;  %v482_v7 = vadd.s32 120, %v1616_v61  ;;  %s881_s3 = sshll.u32 %s1967_s12, 7 }
  0xb9   : > { %v402_v10 = vmul.f32 %v401_v9, %v350_v4  ;;  %v406_v12 = vstv %s405_s29  ;;  %s387_s5 = sld [smem:[#allocation4 + %s386_s4]]  ;;  %s721_s1 = sshll.u32 %s1568_s16, 4  ;;  %s1843_s1 = int_to_ptr.vmem [resolvable:$true] %s721_s1 }
  0xba   : > { %v398_v11 = vadd.f32 %v397_v8, %v393_v6  ;;  %v374_v16 = vstv %s373_s27  ;;  %s412_s27 = sld [smem:[#allocation9 + %s1578_s30]]  ;;  %v481_v6 = vadd.s32 112, %v1616_v61  ;;  %v485_v8 = vsub.s32 0, %v1616_v61  ;;  %s708_s11 = scalar_lea.sflag [#allocation6], %s1541_s22 }
  0xbb   : > { %v378_v17 = vstv %s377_s8  ;;  %v375_v21 = vmul.f32 %v374_v16, %v348_v2  ;;  %s418_s8 = sld [smem:[#allocation9 + %s1968_s6]]  ;;  %v1647_v16 = vadd.s32 64, %v1616_v61  ;;  %s1145_s4 = scalar_lea.vmem %s1843_s1, 128 }
  0xbc   : > { %v403_v14 = vadd.f32 %v402_v10, %v398_v11  ;;  %v379_v22 = vmul.f32 %v378_v17, %v349_v3  ;;  %v365_v24 = vstv %s364_s14  ;;  %s1969_s21 = sld [smem:[#allocation34_spill]]  ;;  %v479_v11 = vadd.s32 96, %v1616_v61  ;;  %p1146_p10 = scmp.ne.s32.totalorder %s1843_s1, %s1145_s4 }
  0xbd   : > { %v383_v25 = vstv %s382_s20  ;;  %v366_v27 = vmul.f32 %v365_v24, %v350_v4  ;;  %s1971_s17 = sld [smem:[#allocation23_spill]]  ;;  %s1289_s12 = smov [#allocation13]  }
  0xbe   : > { %v407_v18 = vadd.f32 %v406_v12, %v403_v14  ;;  %v380_v28 = vadd.f32 %v379_v22, %v375_v21  ;;  %v384_v29 = vmul.f32 %v383_v25, %v350_v4  ;;  %v370_v32 = vstv %s369_s24  ;;  %s1981_s15 = sld [smem:[#allocation26_spill]]  ;;  %s1149_s24 = sshll.u32 %s1289_s12, 4  ;;  %s1150_s24 = int_to_ptr.vmem [resolvable:$false] %s1149_s24 }
  0xbf   : > { %v367_v30 = vadd.f32 %v366_v27, %v362_v26  ;;  %v388_v33 = vstv %s387_s5  ;;  %v480_v12 = vadd.s32 104, %v1616_v61  ;;  %v477_v14 = vadd.s32 80, %v1616_v61  ;;  %s1982_s20 = sld [smem:[#allocation36_spill]]  ;;  %s1151_s5 = scalar_lea.vmem %s1150_s24, 256 }
  0xc0   : > { %v408_v23 = vmax.f32 %v407_v18, 1e-05  ;;  %v385_v31 = vadd.f32 %v384_v29, %v380_v28  ;;  %v413_v37 = vstv %s412_s27  ;;  %v1659_v21 = vadd.s32 48, %v1616_v61  ;;  %p1152_p5 = scmp.lt.s32.totalorder %s1843_s1, %s1150_s24  ;;  %p1153_p12 = scmp.lt.s32.totalorder %s1151_s5, %s1145_s4 }
  0xc1   : > { %v371_v34 = vadd.f32 %v370_v32, %v367_v30  ;;  %v419_v38 = vstv %s418_s8  ;;  %v1662_v22 = vadd.s32 56, %v1616_v61  ;;  %v1673_v27 = vadd.s32 40, %v1616_v61 }
  0xc2   : > { %1053 = vrcp.f32 %v408_v23  ;;  %v389_v35 = vadd.f32 %v388_v33, %v385_v31  ;;  %s1970_s18 = scalar_lea.vmem %s1969_s21, %s2010_s13  ;;  %v1665_v23 = vadd.s32 32, %v1616_v61  ;;  %v1681_v30 = vadd.s32 16, %v1616_v61  ;;  %p1154_p13 = por %p1153_p12, %p1152_p5 }
  0xc3   : > { %v351_v49 = vld [vmem:[%s1970_s18] sm:$0x1]  ;;  %s879_s13 = sshll.u32 %s1971_s17, 7  ;;  %v1684_v31 = vadd.s32 24, %v1616_v61 }
  0xc4   : > { %vm1612_vm1 = vcmp.eq.s32.totalorder %v351_v49, %v352_v50  ;;  %v464_v5 = vstv %s879_s13  ;;  %p1983_p3 = scmp.ne.s32.totalorder %s1981_s15, 0 }
  0xc5   : > { %s1841_s23 = scalar_lea.hbm %s1982_s20, %s881_s3 }
  0xc6   : > { %p1147_p2 = pnand %p1146_p10, %p1983_p3 }
  0xc8   : > { %p1148_p7 = pneg %p1147_p2 }
  0xca   : > { %p1155_p8 = pnand %p1154_p13, %p1148_p7 }
  0xcf   : > { %v1054_v36 = vpop.eup %1053 }
  0xd0   : > { %v411_v39 = vmul.f32 %v1054_v36, %v371_v34  ;;  %v417_v40 = vmul.f32 %v1054_v36, %v389_v35 }
  0xd2   : > { %v414_v41 = vmul.f32 %v413_v37, %v411_v39  ;;  %v420_v42 = vmul.f32 %v419_v38, %v417_v40 }
  0xd4   : > { %v415_v43 = vmax.f32 %v414_v41, -8.0  ;;  %v421_v44 = vmax.f32 %v420_v42, -8.0 }
  0xd6   : > { %v416_v45 = vmin.f32 %v415_v43, 24.0  ;;  %v422_v46 = vmin.f32 %v421_v44, 24.0 }
  0xd8   : > { %v423_v47 = vfloor.f32 %v416_v45  ;;  %v424_v48 = vfloor.f32 %v422_v46 }
  0xda   : > { %v427_v51 = vsub.f32 %v422_v46, %v424_v48  ;;  %v913_v52 = vtrunc.f32 %v423_v47  ;;  %v915_v53 = vtrunc.f32 %v424_v48  ;;  %v425_v55 = vsub.f32 %v416_v45, %v423_v47 }
  0xdc   : > { %v914_v57 = vcvt.f32.s32 %v913_v52  ;;  %v428_v58 = vsub.f32 1.0, %v427_v51  ;;  %v916_v59 = vcvt.f32.s32 %v915_v53  ;;  %v426_v62 = vsub.f32 1.0, %v425_v55 }
  0xdd   : > { %v457_v25 = vmul.f32 %v427_v51, %v425_v55 }
  0xde   : > { %v431_v60 = vadd.s32 1, %v914_v57  ;;  %vm434_vm2 = vcmp.ge.s32.totalorder %v914_v57, 0  ;;  %vm436_vm4 = vcmp.lt.s32.totalorder %v914_v57, 16  ;;  %vm438_vm5 = vcmp.ge.s32.totalorder %v916_v59, 0 }
  0xdf   : > { %vm435_vm3 = vmand %vm1612_vm1, %vm434_vm2  ;;  %vm440_vm6 = vcmp.lt.s32.totalorder %v916_v59, 16  ;;  %v432_v63 = vadd.s32 1, %v916_v59  ;;  %v433_v2 = vmul.f32 %v428_v58, %v426_v62  ;;  %v461_v3 = vmul.u32 16, %v916_v59 }
  0xe0   : > { %vm1621_vm7 = vmand %vm435_vm3, %vm436_vm4  ;;  %vm444_vm8 = vcmp.ge.s32.totalorder %v431_v60, 0  ;;  %vm446_vm10 = vcmp.lt.s32.totalorder %v431_v60, 16  ;;  %v443_v9 = vmul.f32 %v428_v58, %v425_v55  ;;  %v451_v18 = vmul.f32 %v427_v51, %v426_v62 }
  0xe1   : > { %vm439_vm9 = vmand %vm1621_vm7, %vm438_vm5  ;;  %v462_v10 = vadd.s32 %v914_v57, %v461_v3  ;;  %vm452_vm14 = vcmp.ge.s32.totalorder %v432_v63, 0  ;;  %vm454_vm0 = vcmp.lt.s32.totalorder %v432_v63, 16 }
  0xe2   : > { %vm1629_vm11 = vmand %vm439_vm9, %vm440_vm6 }
  0xe3   : > { %vm445_vm12 = vmand %vm1612_vm1, %vm444_vm8  ;;  %v442_v17 = vsel %vm1629_vm11, %v433_v2, 0.0  ;;  %v465_v19 = vsub.s32 %v462_v10, %v464_v5 }
  0xe4   : > { %vm1640_vm13 = vmand %vm445_vm12, %vm446_vm10  ;;  %v1678_v29 = vrot.slane %v442_v17, %v485_v8 }
  0xe5   : > { %vm448_vm15 = vmand %vm1640_vm13, %vm438_vm5  ;;  %v1670_v26 = vrot.slane %v465_v19, %v485_v8 }
  0xe6   : > { %vm449_vm1 = vmand %vm448_vm15, %vm440_vm6 }
  0xe7   : > { %v450_v24 = vsel %vm449_vm1, %v443_v9, 0.0  ;;  %vm453_vm2 = vmand %vm1621_vm7, %vm452_vm14  ;;  %v501_v33 = vsub.s32 %v481_v6, %v1670_v26  ;;  %v502_v34 = vsub.s32 %v482_v7, %v1670_v26  ;;  %v499_v35 = vsub.s32 %v479_v11, %v1670_v26 }
  0xe8   : > { %vm455_vm3 = vmand %vm453_vm2, %vm454_vm0  ;;  %v1676_v28 = vrot.slane %v450_v24, %v485_v8  ;;  %v500_v37 = vsub.s32 %v480_v12, %v1670_v26  ;;  %v1697_v38 = vsub.s32 %v477_v14, %v1670_v26  ;;  %v1700_v39 = vsub.s32 %v478_v15, %v1670_v26 }
  0xe9   : > { %v456_v32 = vsel %vm455_vm3, %v451_v18, 0.0  ;;  %vm458_vm4 = vmand %vm1640_vm13, %vm452_vm14  ;;  %vm517_vm6 = vcmp.eq.s32.totalorder %v501_v33, 0  ;;  %vm518_vm7 = vcmp.eq.s32.totalorder %v502_v34, 0  ;;  %vm533_vm8 = vcmp.eq.s32.totalorder %v501_v33, 1 }
  0xea   : > { %vm459_vm5 = vmand %vm458_vm4, %vm454_vm0  ;;  %v1693_v36 = vrot.slane %v456_v32, %v485_v8  ;;  %vm534_vm9 = vcmp.eq.s32.totalorder %v502_v34, 1  ;;  %vm549_vm10 = vcmp.eq.s32.totalorder %v501_v33, 16  ;;  %vm550_vm11 = vcmp.eq.s32.totalorder %v502_v34, 16 }
  0xeb   : > { %v460_v40 = vsel %vm459_vm5, %v457_v25, 0.0  ;;  %vm565_vm12 = vcmp.eq.s32.totalorder %v501_v33, 17  ;;  %vm566_vm13 = vcmp.eq.s32.totalorder %v502_v34, 17  ;;  %vm515_vm14 = vcmp.eq.s32.totalorder %v499_v35, 0 }
  0xec   : > { %v1702_v41 = vrot.slane %v460_v40, %v485_v8  ;;  %vm516_vm15 = vcmp.eq.s32.totalorder %v500_v37, 0  ;;  %vm531_vm0 = vcmp.eq.s32.totalorder %v499_v35, 1  ;;  %vm532_vm1 = vcmp.eq.s32.totalorder %v500_v37, 1 }
  0xed   : > { %vm547_vm2 = vcmp.eq.s32.totalorder %v499_v35, 16  ;;  %vm548_vm3 = vcmp.eq.s32.totalorder %v500_v37, 16  ;;  %vm563_vm4 = vcmp.eq.s32.totalorder %v499_v35, 17  ;;  %vm564_vm5 = vcmp.eq.s32.totalorder %v500_v37, 17 }
  0xee   : > { %v587_v42 = vsel %vm565_vm12, %v1702_v41, 0.0  ;;  %v588_v43 = vsel %vm566_vm13, %v1702_v41, 0.0  ;;  %v585_v46 = vsel %vm563_vm4, %v1702_v41, 0.0  ;;  %v586_v47 = vsel %vm564_vm5, %v1702_v41, 0.0 }
  0xef   : > { %v609_v44 = vsel %vm549_vm10, %v1693_v36, %v587_v42  ;;  %v610_v45 = vsel %vm550_vm11, %v1693_v36, %v588_v43  ;;  %v607_v50 = vsel %vm547_vm2, %v1693_v36, %v585_v46  ;;  %v608_v51 = vsel %vm548_vm3, %v1693_v36, %v586_v47 }
  0xf0   : > { %v631_v48 = vsel %vm533_vm8, %v1676_v28, %v609_v44  ;;  %v632_v49 = vsel %vm534_vm9, %v1676_v28, %v610_v45  ;;  %v629_v54 = vsel %vm531_vm0, %v1676_v28, %v607_v50  ;;  %v630_v55 = vsel %vm532_vm1, %v1676_v28, %v608_v51 }
  0xf1   : > { %v653_v52 = vsel %vm517_vm6, %v1678_v29, %v631_v48  ;;  %v654_v53 = vsel %vm518_vm7, %v1678_v29, %v632_v49  ;;  %v651_v57 = vsel %vm515_vm14, %v1678_v29, %v629_v54  ;;  %v652_v58 = vsel %vm516_vm15, %v1678_v29, %v630_v55 }
  0xf2   : > { %v662_v56 = vpack.c.bf16 %v654_v53, %v653_v52  ;;  %vm513_vm8 = vcmp.eq.s32.totalorder %v1697_v38, 0  ;;  %v661_v59 = vpack.c.bf16 %v652_v58, %v651_v57  ;;  %vm514_vm6 = vcmp.eq.s32.totalorder %v1700_v39, 0 }
  0xf3   : > { %vm529_vm7 = vcmp.eq.s32.totalorder %v1697_v38, 1  ;;  %vm530_vm9 = vcmp.eq.s32.totalorder %v1700_v39, 1  ;;  %vm545_vm10 = vcmp.eq.s32.totalorder %v1697_v38, 16  ;;  %vm546_vm11 = vcmp.eq.s32.totalorder %v1700_v39, 16 }
  0xf4   : > { %894 = vmatpush3.bf16.msra.mxu0 %v662_v56  ;;  %vm561_vm12 = vcmp.eq.s32.totalorder %v1697_v38, 17  ;;  %vm562_vm13 = vcmp.eq.s32.totalorder %v1700_v39, 17  ;;  %v495_v63 = vsub.s32 %v1647_v16, %v1670_v26  ;;  %v496_v0 = vsub.s32 %v1656_v20, %v1670_v26 }
  0xf5   : > { %895 = vmatprep.subr.bf16.mxu0 %v1287_v1  ;;  %v583_v60 = vsel %vm561_vm12, %v1702_v41, 0.0  ;;  %v584_v62 = vsel %vm562_vm13, %v1702_v41, 0.0  ;;  %v493_v4 = vsub.s32 %v1659_v21, %v1670_v26  ;;  %v494_v5 = vsub.s32 %v1662_v22, %v1670_v26 }
  0xf6   : > { %v605_v2 = vsel %vm545_vm10, %v1693_v36, %v583_v60  ;;  %v606_v3 = vsel %vm546_vm11, %v1693_v36, %v584_v62  ;;  %vm511_vm14 = vcmp.eq.s32.totalorder %v495_v63, 0  ;;  %vm512_vm15 = vcmp.eq.s32.totalorder %v496_v0, 0 }
  0xf7   : > { %v627_v6 = vsel %vm529_vm7, %v1676_v28, %v605_v2  ;;  %v628_v7 = vsel %vm530_vm9, %v1676_v28, %v606_v3  ;;  %vm527_vm0 = vcmp.eq.s32.totalorder %v495_v63, 1  ;;  %vm528_vm1 = vcmp.eq.s32.totalorder %v496_v0, 1  ;;  %v704_v3 = vld [vmem:[%s1568_s16] sm:$0xff] }
  0xf8   : > { %896 = vmatpush3.bf16.msra.mxu0 %v661_v59  ;;  %v649_v8 = vsel %vm513_vm8, %v1678_v29, %v627_v6  ;;  %v650_v9 = vsel %vm514_vm6, %v1678_v29, %v628_v7  ;;  %vm543_vm2 = vcmp.eq.s32.totalorder %v495_v63, 16  ;;  %vm544_vm3 = vcmp.eq.s32.totalorder %v496_v0, 16 }
  0xf9   : > { %897 = vmatprep.subr.bf16.mxu0 %v1287_v1  ;;  %v660_v10 = vpack.c.bf16 %v650_v9, %v649_v8  ;;  %vm559_vm4 = vcmp.eq.s32.totalorder %v495_v63, 17  ;;  %vm560_vm5 = vcmp.eq.s32.totalorder %v496_v0, 17  ;;  %vm509_vm7 = vcmp.eq.s32.totalorder %v493_v4, 0 }
  0xfa   : > { %v581_v11 = vsel %vm559_vm4, %v1702_v41, 0.0  ;;  %vm510_vm9 = vcmp.eq.s32.totalorder %v494_v5, 0  ;;  %v582_v12 = vsel %vm560_vm5, %v1702_v41, 0.0  ;;  %vm525_vm8 = vcmp.eq.s32.totalorder %v493_v4, 1 }
  0xfb   : > { %v603_v13 = vsel %vm543_vm2, %v1693_v36, %v581_v11  ;;  %vm526_vm10 = vcmp.eq.s32.totalorder %v494_v5, 1  ;;  %v604_v14 = vsel %vm544_vm3, %v1693_v36, %v582_v12  ;;  %vm541_vm6 = vcmp.eq.s32.totalorder %v493_v4, 16 }
  0xfc   : > { %898 = vmatpush3.bf16.msra.mxu0 %v660_v10  ;;  %v625_v15 = vsel %vm527_vm0, %v1676_v28, %v603_v13  ;;  %vm542_vm11 = vcmp.eq.s32.totalorder %v494_v5, 16  ;;  %v626_v16 = vsel %vm528_vm1, %v1676_v28, %v604_v14  ;;  %vm557_vm12 = vcmp.eq.s32.totalorder %v493_v4, 17 }
  0xfd   : > { %899 = vmatprep.subr.bf16.mxu0 %v1287_v1  ;;  %v647_v17 = vsel %vm511_vm14, %v1678_v29, %v625_v15  ;;  %vm558_vm13 = vcmp.eq.s32.totalorder %v494_v5, 17  ;;  %v648_v18 = vsel %vm512_vm15, %v1678_v29, %v626_v16  ;;  %v579_v19 = vsel %vm557_vm12, %v1702_v41, 0.0 }
  0xfe   : > { %v580_v20 = vsel %vm558_vm13, %v1702_v41, 0.0  ;;  %v491_v21 = vsub.s32 %v1665_v23, %v1670_v26  ;;  %v659_v22 = vpack.c.bf16 %v648_v18, %v647_v17  ;;  %v601_v24 = vsel %vm541_vm6, %v1693_v36, %v579_v19 }
  0xff   : > { %v602_v25 = vsel %vm542_vm11, %v1693_v36, %v580_v20  ;;  %v492_v32 = vsub.s32 %v1673_v27, %v1670_v26  ;;  %v623_v33 = vsel %vm525_vm8, %v1676_v28, %v601_v24  ;;  %v468_v35 = vadd.s32 8, %v1616_v61 }
 0x100   : > { %v624_v34 = vsel %vm526_vm10, %v1676_v28, %v602_v25  ;;  %vm507_vm14 = vcmp.eq.s32.totalorder %v491_v21, 0  ;;  %900 = vmatpush3.bf16.msra.mxu0 %v659_v22  ;;  %v645_v23 = vsel %vm509_vm7, %v1678_v29, %v623_v33  ;;  %vm523_vm15 = vcmp.eq.s32.totalorder %v491_v21, 1 }
 0x101   : > { %v646_v37 = vsel %vm510_vm9, %v1678_v29, %v624_v34  ;;  %vm524_vm0 = vcmp.eq.s32.totalorder %v492_v32, 1  ;;  %901 = vmatprep.subr.bf16.mxu0 %v1287_v1  ;;  %vm539_vm1 = vcmp.eq.s32.totalorder %v491_v21, 16  ;;  %vm540_vm2 = vcmp.eq.s32.totalorder %v492_v32, 16 }
 0x102   : > { %v658_v27 = vpack.c.bf16 %v646_v37, %v645_v23  ;;  %vm555_vm3 = vcmp.eq.s32.totalorder %v491_v21, 17  ;;  %vm556_vm4 = vcmp.eq.s32.totalorder %v492_v32, 17  ;;  %v489_v39 = vsub.s32 %v1681_v30, %v1670_v26 }
 0x103   : > { %v577_v38 = vsel %vm555_vm3, %v1702_v41, 0.0  ;;  %v490_v40 = vsub.s32 %v1684_v31, %v1670_v26  ;;  %vm508_vm5 = vcmp.eq.s32.totalorder %v492_v32, 0  ;;  %v578_v42 = vsel %vm556_vm4, %v1702_v41, 0.0 }
 0x104   : > { %v599_v43 = vsel %vm539_vm1, %v1693_v36, %v577_v38  ;;  %902 = vmatpush3.bf16.msra.mxu0 %v658_v27  ;;  %v600_v44 = vsel %vm540_vm2, %v1693_v36, %v578_v42  ;;  %v487_v46 = vsub.s32 %v1616_v61, %v1670_v26  ;;  %v488_v47 = vsub.s32 %v468_v35, %v1670_v26 }
 0x105   : > { %v621_v45 = vsel %vm523_vm15, %v1676_v28, %v599_v43  ;;  %903 = vmatprep.subr.bf16.mxu0 %v1287_v1  ;;  %v622_v30 = vsel %vm524_vm0, %v1676_v28, %v600_v44  ;;  %vm505_vm7 = vcmp.eq.s32.totalorder %v489_v39, 0  ;;  %vm521_vm9 = vcmp.eq.s32.totalorder %v489_v39, 1 }
 0x106   : > { %v643_v31 = vsel %vm507_vm14, %v1678_v29, %v621_v45  ;;  %v644_v48 = vsel %vm508_vm5, %v1678_v29, %v622_v30  ;;  %vm537_vm8 = vcmp.eq.s32.totalorder %v489_v39, 16  ;;  %vm538_vm10 = vcmp.eq.s32.totalorder %v490_v40, 16 }
 0x107   : > { %vm553_vm6 = vcmp.eq.s32.totalorder %v489_v39, 17  ;;  %v657_v49 = vpack.c.bf16 %v644_v48, %v643_v31  ;;  %vm522_vm11 = vcmp.eq.s32.totalorder %v490_v40, 1  ;;  %vm554_vm12 = vcmp.eq.s32.totalorder %v490_v40, 17 }
 0x108   : > { %v575_v61 = vsel %vm553_vm6, %v1702_v41, 0.0  ;;  %vm506_vm13 = vcmp.eq.s32.totalorder %v490_v40, 0  ;;  %v576_v26 = vsel %vm554_vm12, %v1702_v41, 0.0  ;;  %vm503_vm15 = vcmp.eq.s32.totalorder %v487_v46, 0 }
 0x109   : > { %v597_v50 = vsel %vm537_vm8, %v1693_v36, %v575_v61  ;;  %904 = vmatpush3.bf16.msra.mxu0 %v657_v49  ;;  %v598_v51 = vsel %vm538_vm10, %v1693_v36, %v576_v26  ;;  %vm519_vm14 = vcmp.eq.s32.totalorder %v487_v46, 1  ;;  %vm535_vm0 = vcmp.eq.s32.totalorder %v487_v46, 16 }
 0x10a   : > { %v619_v52 = vsel %vm521_vm9, %v1676_v28, %v597_v50  ;;  %905 = vmatprep.subr.bf16.mxu0 %v1287_v1  ;;  %v620_v53 = vsel %vm522_vm11, %v1676_v28, %v598_v51  ;;  %vm536_vm1 = vcmp.eq.s32.totalorder %v488_v47, 16  ;;  %vm551_vm2 = vcmp.eq.s32.totalorder %v487_v46, 17 }
 0x10b   : > { %v641_v54 = vsel %vm505_vm7, %v1678_v29, %v619_v52  ;;  %v642_v55 = vsel %vm506_vm13, %v1678_v29, %v620_v53  ;;  %vm520_vm3 = vcmp.eq.s32.totalorder %v488_v47, 1  ;;  %vm552_vm4 = vcmp.eq.s32.totalorder %v488_v47, 17 }
 0x10c   : > { %v573_v56 = vsel %vm551_vm2, %v1702_v41, 0.0  ;;  %v656_v57 = vpack.c.bf16 %v642_v55, %v641_v54  ;;  %vm504_vm5 = vcmp.eq.s32.totalorder %v488_v47, 0  ;;  %v574_v58 = vsel %vm552_vm4, %v1702_v41, 0.0 }
 0x10d   : > { %v595_v59 = vsel %vm535_vm0, %v1693_v36, %v573_v56  ;;  %v596_v60 = vsel %vm536_vm1, %v1693_v36, %v574_v58  ;;  %v663_v36 = vld [vmem:[%s1980_s10] sm:$0xf] }
 0x10e   : > { %v617_v62 = vsel %vm519_vm14, %v1676_v28, %v595_v59  ;;  %906 = vmatpush3.bf16.msra.mxu0 %v656_v57  ;;  %v618_v63 = vsel %vm520_vm3, %v1676_v28, %v596_v60 }
 0x10f   : > { %v639_v0 = vsel %vm503_vm15, %v1678_v29, %v617_v62  ;;  %907 = vmatprep.subr.bf16.mxu0 %v1287_v1  ;;  %v640_v2 = vsel %vm504_vm5, %v1678_v29, %v618_v63 }
 0x110   : > { %v655_v41 = vpack.c.bf16 %v640_v2, %v639_v0 }
 0x112   : > { %908 = vmatpush3.bf16.msra.mxu0 %v655_v41 }
 0x115   : > { %910 = vmatmul.mubr.bf16.vlgmr.msra.gmra.mxu0 %v663_v36 }
 0x1d5   : > { %v698_v4 = vpop.f32.mrf.mxu0 }
 0x1d6   : > { %v705_v28 = vadd.f32 %v704_v3, %v698_v4 }
 0x1d7   : > { %v911_v1 = vpop.f32.mrf.mxu0 }
 0x1d8   : > { %706 = vst [vmem:[%s1568_s16] sm:$0xff] %v705_v28 }
 0x1d9   : > { %v701_v29 = vpop.f32.mrf.mxu0 }
 0x1da   : > { %1158 = shalt.err (!%p1155_p8)
}
 0x1db   : > { %s1159_s16 = scalar_lea.hbm %s1841_s23, 128  ;;  %s1163_s6 = scalar_lea.hbm %s1982_s20, 384 }
 0x1dc   : > { %p1160_p9 = scmp.ne.s32.totalorder %s1841_s23, %s1159_s16  ;;  %p1164_p4 = scmp.lt.s32.totalorder %s1841_s23, %s1982_s20 }
 0x1dd   : > { %p1165_p6 = scmp.lt.s32.totalorder %s1163_s6, %s1159_s16 }
 0x1de   : > { %p1161_p11 = pnand %p1160_p9, %p1983_p3 }
 0x1df   : > { %p1166_p0 = por %p1165_p6, %p1164_p4 }
 0x1e0   : > { %p1162_p1 = pneg %p1161_p11 }
 0x1e2   : > { %p1167_p10 = pnand %p1166_p0, %p1162_p1 }
 0x1e4   : > { %1170 = shalt.err (!%p1167_p10)
}
 0x1e5   : > { %931 = dma.vmem_to_hbm [thread:$0]  (%p1983_p3), %s1843_s1, 128, %s1841_s23, %s708_s11   ;;  %v912_v5 = vpop.f32.mrf.mxu0 }
 0x1e6 PF: > { %s1984_s19 = sld [smem:[#allocation22_spill]]  ;;  %p958_p2 = scmp.ge.s32.totalorder %s1279_s9, 2 }
 0x1e7   : > { %s1985_s21 = sld [smem:[#allocation27_spill]] }
 0x1ec   : > { %s733_s18 = sand.u32 1, %s1984_s19  }
 0x1ed   : > { %p1986_p7 = scmp.ne.s32.totalorder %s1985_s21, 0  ;;  %s734_s17 = scalar_lea.sflag [#allocation6], %s733_s18 }
 0x1ef   : > { %p950_p5 = pnand %p958_p2, %p1986_p7 }
 0x1f1   : > { %p951_p12 = pneg %p950_p5 }
 0x1f3   : > { %1234 = dma.done.wait (%p951_p12), %s734_s17, 128  }
 0x1f4   : > { %1236 = vsyncadd (%p951_p12), %s734_s17, 4294967168  ;;  %s31_s9 = sadd.s32 1, %s1279_s9   ;;  %s1987_s13 = sld [smem:[#allocation30_spill]] }
 0x1f5   : > { %p28_p13 = scmp.ge.s32.totalorder %s31_s9, 8   ;;  %s1988_s30 = sld [smem:[#allocation25_spill]] }
 0x1f6   : > { %s1989_s10 = sld [smem:[#allocation28_spill]]  ;;  %s1991_s24 = smov %s1243_s25 }
 0x1f7   : > { %s1990_s8 = sld [smem:[#allocation29_spill]]  ;;  %s1992_s25 = smov %s1247_s26 }
 0x1f8   : > { %s1993_s26 = smov %s1508_s2  ;;  %s1994_s27 = smov %s1255_s0 }
 0x1f9   : > { %s1995_s0 = smov %s1259_s28  ;;  %s1997_s29 = smov %s1271_s7 }
 0x1fa   : > { %s1996_s28 = smov %s1987_s13  ;;  %30 = sbr.rel (!%p28_p13) target bundleno = 24 (0x18), region = 115 }
 0x1fc   : > { %s1998_s7 = smov %s1989_s10 }
 0x1ff   :  { %739 = vsyncpa [#allocation5], 1 }
 0x200   :  { %741 = vsyncpa [#allocation5 + $0x1], 1 }
 0x201   :  { %742 = vsyncpa [#allocation12], 1 }
 0x202   :  { %744 = vsyncpa [#allocation12 + $0x1], 1 }
 0x203   :  { %745 = vsyncpa [#allocation6], 1 }
 0x204   :  { %747 = vsyncpa [#allocation6 + $0x1], 1 }
 0x205   :  { %748 = vsyncpa [#allocation7], 1 }
 0x206   :  { %750 = vsyncpa [#allocation7 + $0x1], 1 }
 0x207   :  { %751 = vsyncpa [#allocation8], 1 }
 0x208   :  { %753 = vsyncpa [#allocation8 + $0x1], 1 }

</bundles_post_ra>
